<compile_context>
chip_gen: v6e
topology: v6e:2x2x1
jax: 0.10.0
libtpu: 0.0.40
codegen_flags: <defaults>
</compile_context>

<pallas_src>
import jax
import jax.numpy as jnp
from jax.experimental import pallas as pl
from jax.experimental.pallas import tpu as pltpu


def _round_up(x, m):
    return ((x + m - 1) // m) * m


# ---------------- Pallas kernel ----------------

def fused_conv_squash_kernel(p_ref, w_ref, b_ref, g_ref, o_ref):
    """One M-tile: (TILE_M, K) @ (K, Cpad) + bias, then squash per capsule group.

    g_ref is a (Cpad, Cpad) block-diagonal 0/1 bf16 matrix; (v*v) @ g broadcasts
    the per-capsule squared length back to every column of that capsule, keeping
    the epilogue fully lane-dense.
    """
    # Conv matmul: bf16 operands, f32 accumulation.
    acc = jnp.dot(p_ref[...], w_ref[...], preferred_element_type=jnp.float32)
    acc = acc + b_ref[...]                                   # (TILE_M, Cpad) f32

    # Per-capsule squared length via a bf16 group-sum matmul (f32 accumulate).
    sq_bf = (acc * acc).astype(jnp.bfloat16)
    lengths2 = jnp.dot(sq_bf, g_ref[...], preferred_element_type=jnp.float32)

    # squash scale = |v|^2 / (1 + |v|^2) / |v| == sqrt(|v|^2) / (1 + |v|^2).
    # sqrt + approx reciprocal both route to the EUP slot; naturally 0 (not NaN)
    # when |v|^2 == 0, so padded capsule columns stay exactly 0.
    scale = jnp.sqrt(lengths2) * pl.reciprocal(1.0 + lengths2, approx=True)
    o_ref[...] = (acc * scale).astype(o_ref.dtype)


# ---------------- glue (plain JAX) ----------------

def im2col_bf16(x, k, s):
    """x: (B, Cin, H, W) NCHW -> bf16 patches (B*Ho*Wo, Cin*k*k), feature order (Cin, kh, kw)."""
    x = x.astype(jnp.bfloat16)
    B, C, H, W = x.shape
    Ho = (H - k) // s + 1
    Wo = (W - k) // s + 1
    cols = []
    for i in range(k):
        for j in range(k):
            cols.append(x[:, :, i:i + s * Ho:s, j:j + s * Wo:s])  # (B, C, Ho, Wo)
    # (B, C, k*k, Ho, Wo) -> flatten features as (C, kh, kw), matching
    # PyTorch conv weight.reshape(Cout, Cin*k*k)
    patches = jnp.stack(cols, axis=2).reshape(B, C * k * k, Ho, Wo)
    patches = patches.transpose(0, 2, 3, 1).reshape(B * Ho * Wo, C * k * k)
    return patches, Ho, Wo


def primary_caps_forward(x, weight, bias, output_channel, output_dim, k, s,
                         tile_m=1024):
    """Equivalent of PrimaryCapsLayer.forward. Returns (B, output_channel*Ho*Wo, output_dim)."""
    B = x.shape[0]
    Cout = weight.shape[0]
    assert Cout == output_channel * output_dim, \
        "conv output channels must equal output_channel * output_dim"
    assert Cout % output_dim == 0

    # im2col in plain JAX, directly in bf16 (MXU feed dtype).
    patches, Ho, Wo = im2col_bf16(x, k, s)
    M, K = patches.shape

    # M tile: multiple of 8, at most ~M/2 so the grid has >=2 steps whenever M
    # allows (keeps both v7x TensorCores busy), default 1024 for big M.
    tile_m = max(8, min(tile_m, _round_up(pl.cdiv(M, 2), 8)))
    M_pad = _round_up(M, tile_m)
    # Lane-dense padding of the output/feature axis.
    C_pad = _round_up(Cout, 128)

    # Padded operands without any f32 intermediate materialization.
    patches_p = jnp.pad(patches, ((0, M_pad - M), (0, 0)))            # bf16
    w_mat = weight.reshape(Cout, K).T.astype(jnp.bfloat16)            # (K, Cout)
    w_p = jnp.pad(w_mat, ((0, 0), (0, C_pad - Cout)))                 # bf16
    b_p = jnp.pad(bias.astype(jnp.float32), (0, C_pad - Cout)).reshape(1, C_pad)

    # Block-diagonal capsule group-sum matrix (Cpad, Cpad), bf16 (exact 0/1).
    # Padded columns form their own all-zero groups, so they never contaminate
    # real capsules (bias padding is exactly zero).
    grp = jnp.arange(C_pad) // output_dim
    g_mat = (grp[:, None] == grp[None, :]).astype(jnp.bfloat16)

    grid = (M_pad // tile_m,)
    out = pl.pallas_call(
        fused_conv_squash_kernel,
        out_shape=jax.ShapeDtypeStruct((M_pad, C_pad), jnp.bfloat16),
        grid=grid,
        in_specs=[
            pl.BlockSpec((tile_m, K), lambda i: (i, 0)),
            pl.BlockSpec((K, C_pad), lambda i: (0, 0)),
            pl.BlockSpec((1, C_pad), lambda i: (0, 0)),
            pl.BlockSpec((C_pad, C_pad), lambda i: (0, 0)),
        ],
        out_specs=pl.BlockSpec((tile_m, C_pad), lambda i: (i, 0)),
        compiler_params=pltpu.CompilerParams(
            dimension_semantics=("parallel",),
            # Per-step VMEM at tile_m=1024: ~1 MiB double-buffered; 32 MiB is
            # plenty of headroom on v5e/v6e (128 MiB) and v7x (64 MiB).
            vmem_limit_bytes=32 * 1024 * 1024,
        ),
    )(patches_p, w_p, b_p, g_mat)

    # Drop padding, then do the (B, OC, Ho, Wo, OD) permute once in plain JAX.
    # (Squash-before-permute == permute-before-squash: each capsule is a
    # contiguous OD-group of one row in the (M, Cout) layout.)
    out = out[:M, :Cout]
    out = out.reshape(B, Ho, Wo, output_channel, output_dim)
    out = out.transpose(0, 3, 1, 2, 4).reshape(B, output_channel * Ho * Wo,
                                               output_dim)
    return out.astype(x.dtype)


# ---------------- pure-JAX reference (for sanity check) ----------------

def reference_forward(x, weight, bias, output_channel, output_dim, k, s):
    out = jax.lax.conv_general_dilated(
        x, weight, window_strides=(s, s), padding="VALID",
        dimension_numbers=("NCHW", "OIHW", "NCHW"))
    out = out + bias.reshape(1, -1, 1, 1)
    B, C, H, W = out.shape
    out = out.reshape(B, output_channel, output_dim, H, W)
    out = out.transpose(0, 1, 3, 4, 2).reshape(B, -1, output_dim)
    l2 = jnp.sum(out * out, axis=2, keepdims=True)
    return out * (l2 / (1.0 + l2) / jnp.sqrt(l2))


if __name__ == "__main__":
    # Module hyper-parameters (small, consistent with PrimaryCapsLayer)
    B, Cin, H, W = 2, 4, 16, 16
    output_channel, output_dim = 8, 4
    kernel_size, stride = 3, 2
    Cout = output_channel * output_dim

    key = jax.random.PRNGKey(0)
    kx, kw, kb = jax.random.split(key, 3)

    x = jax.random.normal(kx, (B, Cin, H, W), dtype=jnp.float32)
    fan_in = Cin * kernel_size * kernel_size
    bound = 1.0 / (fan_in ** 0.5)
    weight = jax.random.uniform(kw, (Cout, Cin, kernel_size, kernel_size),
                                dtype=jnp.float32, minval=-bound, maxval=bound)
    bias = jax.random.uniform(kb, (Cout,), dtype=jnp.float32,
                              minval=-bound, maxval=bound)

    out = primary_caps_forward(x, weight, bias, output_channel, output_dim,
                               kernel_size, stride)
    out = jax.block_until_ready(out)

    ref = reference_forward(x, weight, bias, output_channel, output_dim,
                            kernel_size, stride)
    assert out.shape == ref.shape, (out.shape, ref.shape)
    # bf16 MXU feed, bf16 group-sum (f32 accumulate), bf16 kernel output and an
    # approx EUP reciprocal => tolerance loosened vs the f32 reference.
    assert jnp.allclose(out, ref, rtol=3e-2, atol=3e-2), "mismatch vs reference"

    print("KERNEL_OK")
</pallas_src>

<mosaic_0001>
module attributes {stable_mosaic.version = 11 : i64} {
  func.func @fused_conv_squash_kernel(%arg0: i32, %arg1: memref<56x36xbf16, #tpu.memory_space<vmem>>, %arg2: memref<36x128xbf16, #tpu.memory_space<vmem>>, %arg3: memref<1x128xf32, #tpu.memory_space<vmem>>, %arg4: memref<128x128xbf16, #tpu.memory_space<vmem>>, %arg5: memref<56x128xbf16, #tpu.memory_space<vmem>>) attributes {dimension_semantics = [#tpu.dimension_semantics<parallel>], iteration_bounds = array<i64: 2>, scalar_prefetch = 0 : i64, scratch_operands = 0 : i64, tpu.core_type = #tpu.core_type<tc>, window_params = [{transform_indices = @transform_0, window_bounds = array<i64: 56, 36>}, {pipeline_mode = #tpu.pipeline_mode<synchronous>, transform_indices = @transform_1, window_bounds = array<i64: 36, 128>}, {pipeline_mode = #tpu.pipeline_mode<synchronous>, transform_indices = @transform_2, window_bounds = array<i64: 1, 128>}, {pipeline_mode = #tpu.pipeline_mode<synchronous>, transform_indices = @transform_3, window_bounds = array<i64: 128, 128>}, {transform_indices = @transform_4, window_bounds = array<i64: 56, 128>}]} {
    %c0 = arith.constant 0 : index
    %c0_0 = arith.constant 0 : index
    %0 = vector.load %arg1[%c0, %c0_0] : memref<56x36xbf16, #tpu.memory_space<vmem>>, vector<56x36xbf16>
    %c0_1 = arith.constant 0 : index
    %c0_2 = arith.constant 0 : index
    %1 = vector.load %arg2[%c0_1, %c0_2] : memref<36x128xbf16, #tpu.memory_space<vmem>>, vector<36x128xbf16>
    %cst = arith.constant dense<0.000000e+00> : vector<56x128xf32>
    %2 = tpu.matmul %0, %1, %cst {dimension_numbers = #tpu.dot_dimension_numbers<[1], [0], [0], [1], [0, 0, 1, 1], [], []>} : vector<56x36xbf16>, vector<36x128xbf16>, vector<56x128xf32> -> vector<56x128xf32>
    %c0_3 = arith.constant 0 : index
    %c0_4 = arith.constant 0 : index
    %3 = vector.load %arg3[%c0_3, %c0_4] : memref<1x128xf32, #tpu.memory_space<vmem>>, vector<1x128xf32>
    %4 = vector.broadcast %3 : vector<1x128xf32> to vector<56x128xf32>
    %5 = arith.addf %2, %4 : vector<56x128xf32>
    %6 = arith.mulf %5, %5 : vector<56x128xf32>
    %7 = arith.truncf %6 : vector<56x128xf32> to vector<56x128xbf16>
    %c0_5 = arith.constant 0 : index
    %c0_6 = arith.constant 0 : index
    %8 = vector.load %arg4[%c0_5, %c0_6] : memref<128x128xbf16, #tpu.memory_space<vmem>>, vector<128x128xbf16>
    %cst_7 = arith.constant dense<0.000000e+00> : vector<56x128xf32>
    %9 = tpu.matmul %7, %8, %cst_7 {dimension_numbers = #tpu.dot_dimension_numbers<[1], [0], [0], [1], [0, 0, 1, 1], [], []>} : vector<56x128xbf16>, vector<128x128xbf16>, vector<56x128xf32> -> vector<56x128xf32>
    %10 = math.sqrt %9 : vector<56x128xf32>
    %cst_8 = arith.constant 1.000000e+00 : f32
    %11 = vector.broadcast %cst_8 : f32 to vector<56x128xf32>
    %12 = arith.addf %11, %9 : vector<56x128xf32>
    %13 = tpu.reciprocal %12 {approx = true} : vector<56x128xf32> -> vector<56x128xf32>
    %14 = arith.mulf %10, %13 : vector<56x128xf32>
    %15 = arith.mulf %5, %14 : vector<56x128xf32>
    %16 = arith.truncf %15 : vector<56x128xf32> to vector<56x128xbf16>
    %c0_9 = arith.constant 0 : index
    %c0_10 = arith.constant 0 : index
    %17 = vector.load %arg5[%c0_9, %c0_10] : memref<56x128xbf16, #tpu.memory_space<vmem>>, vector<56x128xbf16>
    tpu.vector_store %arg5[%c0_9, %c0_10], %16 {strides = array<i32>} : memref<56x128xbf16, #tpu.memory_space<vmem>>, vector<56x128xbf16>,
    return
  }
  func.func @transform_0(%arg0: i32) -> (i32, i32) {
    %c0_i32 = arith.constant 0 : i32
    %c0_i32_0 = arith.constant 0 : i32
    return %arg0, %c0_i32 : i32, i32
  }
  func.func @transform_1(%arg0: i32) -> (i32, i32) {
    %c0_i32 = arith.constant 0 : i32
    %c0_i32_0 = arith.constant 0 : i32
    %c0_i32_1 = arith.constant 0 : i32
    return %c0_i32, %c0_i32_0 : i32, i32
  }
  func.func @transform_2(%arg0: i32) -> (i32, i32) {
    %c0_i32 = arith.constant 0 : i32
    %c0_i32_0 = arith.constant 0 : i32
    %c0_i32_1 = arith.constant 0 : i32
    return %c0_i32, %c0_i32_0 : i32, i32
  }
  func.func @transform_3(%arg0: i32) -> (i32, i32) {
    %c0_i32 = arith.constant 0 : i32
    %c0_i32_0 = arith.constant 0 : i32
    %c0_i32_1 = arith.constant 0 : i32
    return %c0_i32, %c0_i32_0 : i32, i32
  }
  func.func @transform_4(%arg0: i32) -> (i32, i32) {
    %c0_i32 = arith.constant 0 : i32
    %c0_i32_0 = arith.constant 0 : i32
    return %arg0, %c0_i32 : i32, i32
  }
}

</mosaic_0001>

<bundles_post_ra>
// kernel: tpu_custom_call.1
= control target key start
LH: loop header
LB: loop body
LE: loop exit
PB: predicated region body
PF: predicated region fallthrough
CT: control target
= control target key end

     0   :  { %9 = vsyncpa [#allocation3], 0  ;;  %s1245_s0 = inlined_call_operand.vmem [shape: bf16[112,36], index: 0, kind: input, shape index: {}]   ;;  %s1246_s1 = inlined_call_operand.hbm [shape: bf16[36,128], index: 1, kind: input, shape index: {}]   ;;  %s1247_s2 = inlined_call_operand.vmem [shape: f32[1,128], index: 2, kind: input, shape index: {}]   ;;  %s1248_s3 = inlined_call_operand.vmem [shape: bf16[128,128], index: 3, kind: input, shape index: {}]   ;;  %s1249_s4 = inlined_call_operand.hbm [shape: bf16[112,128], index: 4, kind: output, shape index: {}]  }
   0x1   :  { %10 = vsyncpa [#allocation4], 0 }
   0x2   :  { %12 = vsyncpa [#allocation4 + $0x1], 0  ;;  %s1029_s15 = smov 0   ;;  %s1031_s16 = smov 0  }
   0x3   :  { %s1033_s17 = smov 0   ;;  %s1035_s18 = smov 0  }
   0x4 LB: > { %s1050_s19 = sadd.s32 4294967295, %s996_s18   ;;  %s688_s20 = sadd.s32 4294967294, %s996_s18   ;;  %s996_s18 = sphi %s1035_s18, %s1257_s18   ;;  %s992_s17 = sphi %s1033_s17, %s1256_s17   ;;  %s988_s16 = sphi %s1031_s16, %s1255_s16   ;;  %s984_s15 = sphi %s1029_s15, %s1254_s15  }
   0x5   : > { %s1054_s21 = sadd.s32 1, %s996_s18   ;;  %s114_s22 = sadd.s32 1, %s992_s17 }
   0x6   : > { %s111_s23 = ssub.s32 %s996_s18, %s1054_s21  ;;  %p124_p0 = scmp.ne.s32.totalorder %s992_s17, %s988_s16 }
   0x7   : > { %p112_p1 = scmp.eq.s32.totalorder %s111_s23, 0  ;;  %p125_p2 = scmp.eq.s32.totalorder %s1050_s19, 1 }
   0x8   : > { %p130_p3 = scmp.ne.s32.totalorder %s988_s16, %s984_s15  ;;  %p131_p4 = scmp.eq.s32.totalorder %s688_s20, 1 }
   0x9   : > { %s1065_s24 = scalar_select %p112_p1, %s992_s17, %s114_s22  }
   0xa   : > { %p1067_p5 = por %p125_p2, %p124_p0  ;;  %p1071_p6 = por %p131_p4, %p130_p3 }
   0xb   : > { %p689_p7 = scmp.ge.s32.totalorder %s996_s18, 1  ;;  %p138_p8 = scmp.lt.s32.totalorder %s996_s18, 3 }
   0xc   : > { %s1251_s26 = scalar_select %p1071_p6, 1, 0 }
   0xd   : > { %p823_p9 = scmp.eq.s32.totalorder %s1050_s19, 0  ;;  %p1078_p10 = pnand %p689_p7, %p138_p8 }
   0xe   : > { %s998_s28 = smov [#allocation2]  }
   0xf   : > { %s150_s29 = sshll.u32 %s998_s28, 4  ;;  %p815_p11 = pneg %p1078_p10  ;;  %s151_s29 = int_to_ptr.vmem [resolvable:$true] %s150_s29 }
  0x10   : > { %s917_s30 = scalar_lea.vmem %s151_s29, 320  ;;  %p925_p3 = scmp.lt.s32.totalorder %s151_s29, %s151_s29 }
  0x11   : > { %p816_p12 = pnand %p823_p9, %p815_p11  ;;  %p918_p0 = scmp.ne.s32.totalorder %s151_s29, %s917_s30 }
  0x12   : > { %p926_p4 = scmp.lt.s32.totalorder %s917_s30, %s917_s30 }
  0x13   : > { %p908_p13 = pneg %p816_p12 }
  0x14   : > { %p927_p6 = por %p926_p4, %p925_p3 }
  0x15   : > { %p920_p1 = pnand %p918_p0, %p908_p13 }
  0x17   : > { %p921_p2 = pneg %p920_p1 }
  0x19   : > { %p928_p7 = pnand %p927_p6, %p921_p2 }
  0x1b   : > { %931 = shalt.err (!%p928_p7)
}
  0x1c   : > { %s999_s5 = smov 64   ;;  %s1000_s6 = smov 4  }
  0x1d   : > { %818 = dma.hbm_to_vmem [thread:$0]  (!%p816_p12), %s1246_s1, 320, %s151_s29, [#allocation3], %s999_s5, %s999_s5, %s1000_s6  }
  0x1e   : > { %181 = sbr.rel (%p1078_p10) target bundleno = 501 (0x1f5), region = 36 }
  0x23   : > { %975 = dma.done.wait (%p823_p9), [#allocation3], 320  }
  0x24   : > { %977 = vsyncadd (%p823_p9), [#allocation3], 4294966976  ;;  %s207_s9 = smul.u32 7, %s1050_s19  ;;  %vm280_vm0 = vcmask 1041408   ;;  %v864_v1 = vld [vmem:[#allocation2 + $0x8] sm:$0xff]   ;;  %vm267_vm1 = vcmask 293888  }
  0x25   : > { %v863_v0 = vld [vmem:[#allocation2 + $0x10] ss:$0 sps:$4 sm:$0x33]   ;;  %v865_v4 = vld [vmem:[#allocation2] sm:$0xff]   ;;  %v870_v5 = vld [vmem:[%s1248_s3 + $0x38] sm:$0xff]   ;;  %s204_s20 = sand.u32 1, %s988_s16  }
  0x26   : > { %p208_p8 = scmp.lt.s32.totalorder %s207_s9, 13  ;;  %807 = vmatprep.subr.msk.bf16.mxu0 %vm280_vm0, %v863_v0  ;;  %v282_v2 = vsel %vm280_vm0, %v863_v0, 0  ;;  %v871_v6 = vld [vmem:[%s1248_s3 + $0x30] sm:$0xff]   ;;  %783 = vmatprep.subr.bf16.mxu1 %v870_v5  ;;  %v872_v9 = vld [vmem:[%s1248_s3 + $0x28] sm:$0xff]   ;;  %v873_v10 = vld [vmem:[%s1248_s3 + $0x20] sm:$0xff]   ;;  %s808_s22 = smul.u32 28, %s204_s20 }
  0x27   : > { %770 = vmatpush3.bf16.msra.mxu0 %v282_v2  ;;  %784 = vmatpush3.bf16.msra.mxu1 %v870_v5  ;;  %v874_v12 = vld [vmem:[%s1248_s3 + $0x18] sm:$0xff]   ;;  %v875_v13 = vld [vmem:[%s1248_s3 + $0x10] sm:$0xff]   ;;  %v876_v14 = vld [vmem:[%s1248_s3 + $0x8] sm:$0xff]   ;;  %s732_s27 = smul.u32 448, %s1050_s19  ;;  %s1205_s19 = scalar_lea.sflag [#allocation4], %s204_s20 }
  0x28   : > { %s1259_s9 = smov (!%p208_p8, %s207_s9), 13  ;;  %771 = vmatprep.subr.bf16.mxu0 %v864_v1  ;;  %785 = vmatprep.subr.bf16.mxu1 %v871_v6  ;;  %v877_v15 = vld [vmem:[%s1248_s3] sm:$0xff]   ;;  %s206_s23 = scalar_lea.vmem [#allocation5], %s808_s22 }
  0x29   : > { %s694_s10 = sshll.u32 %s1259_s9, 2  ;;  %v695_v18 = vld [vmem:[%s1247_s2] ss:$0 sm:$0xff]  ;;  %s614_s28 = sshll.u32 %s206_s23, 4  ;;  %s1201_s28 = int_to_ptr.vmem [resolvable:$true] %s614_s28 }
  0x2a   : > { %s211_s13 = scalar_lea.vmem %s1245_s0, %s694_s10  ;;  %s1199_s5 = scalar_lea.hbm %s1249_s4, %s732_s27 }
  0x2b   : > { %v866_v3 = vld [vmem:[%s211_s13] sm:$0xff]   ;;  %772 = vmatpush3.bf16.msra.mxu0 %v864_v1  ;;  %v867_v7 = vld [vmem:[%s211_s13 + $0x8] sm:$0xff]   ;;  %v868_v8 = vld [vmem:[%s211_s13 + $0x10] sm:$0xff]   ;;  %786 = vmatpush3.bf16.msra.mxu1 %v871_v6  ;;  %s932_s6 = scalar_lea.vmem %s1201_s28, 448  ;;  %s1001_s7 = smov [#allocation5]  }
  0x2c   : > { %775 = vmatprep.mubr.msk.bf16.mxu0 %vm267_vm1, %v866_v3  ;;  %773 = vmatprep.subr.bf16.mxu0 %v865_v4  ;;  %v869_v11 = vld [vmem:[%s211_s13 + $0x18] ss:$0 sps:$4 sm:$0xff]   ;;  %p933_p6 = scmp.ne.s32.totalorder %s1201_s28, %s932_s6  ;;  %s936_s8 = sshll.u32 %s1001_s7, 4  ;;  %s937_s8 = int_to_ptr.vmem [resolvable:$false] %s936_s8 }
  0x2d   : > { %787 = vmatprep.subr.bf16.mxu1 %v872_v9  ;;  %s938_s9 = scalar_lea.vmem %s937_s8, 896  ;;  %p939_p11 = scmp.lt.s32.totalorder %s1201_s28, %s937_s8 }
  0x2e   : > { %p934_p9 = pnand %p933_p6, %p1067_p5  ;;  %p940_p12 = scmp.lt.s32.totalorder %s938_s9, %s932_s6 }
  0x2f   : > { %774 = vmatpush3.bf16.msra.mxu0 %v865_v4  ;;  %788 = vmatpush3.bf16.msra.mxu1 %v872_v9 }
  0x30   : > { %789 = vmatprep.subr.bf16.mxu1 %v873_v10  ;;  %p935_p10 = pneg %p934_p9  ;;  %p941_p13 = por %p940_p12, %p939_p11 }
  0x32   : > { %776 = vmatmul.mubr.msk.bf16.vlgmr.msra.gmra.mxu0 %vm267_vm1, %v867_v7  ;;  %p942_p0 = pnand %p941_p13, %p935_p10 }
  0x33   : > { %779 = vmatprep.mubr.msk.bf16.mxu0 %vm267_vm1, %v868_v8  ;;  %790 = vmatpush3.bf16.msra.mxu1 %v873_v10 }
  0x34   : > { %791 = vmatprep.subr.bf16.mxu1 %v874_v12 }
  0x37   : > { %792 = vmatpush3.bf16.msra.mxu1 %v874_v12 }
  0x38   : > { %793 = vmatprep.subr.bf16.mxu1 %v875_v13 }
  0x3a   : > { %780 = vmatmul.mubr.msk.bf16.gmra.mxu0 %vm267_vm1, %v869_v11 }
  0x3b   : > { %794 = vmatpush3.bf16.msra.mxu1 %v875_v13 }
  0x3c   : > { %795 = vmatprep.subr.bf16.mxu1 %v876_v14 }
  0x3f   : > { %796 = vmatpush3.bf16.msra.mxu1 %v876_v14 }
  0x40   : > { %797 = vmatprep.subr.bf16.mxu1 %v877_v15 }
  0x43   : > { %798 = vmatpush3.bf16.msra.mxu1 %v877_v15 }
  0xf2   : > { %v777_v16 = vpop.f32.mrf.mxu0 }
  0xf3   : > { %v1134_v22 = vadd.f32 %v777_v16, %v695_v18 }
  0xf4   : > { %v318_v17 = vpop.f32.mrf.mxu0 }
  0xf5   : > { %v1130_v20 = vadd.f32 %v695_v18, %v318_v17  ;;  %v350_v29 = vmul.f32 %v1134_v22, %v1134_v22 }
  0xf6   : > { %v778_v19 = vpop.f32.mrf.mxu0 }
  0xf7   : > { %v1132_v21 = vadd.f32 %v778_v19, %v695_v18  ;;  %v348_v27 = vmul.f32 %v1130_v20, %v1130_v20 }
  0xf8   : > { %v321_v23 = vpop.f32.mrf.mxu0 }
  0xf9   : > { %v1136_v24 = vadd.f32 %v695_v18, %v321_v23  ;;  %v351_v25 = vmul.f32 %v1132_v21, %v1132_v21 }
  0xfa   : > { %v781_v26 = vpop.f32.mrf.mxu0 }
  0xfb   : > { %v349_v28 = vmul.f32 %v1136_v24, %v1136_v24  ;;  %v1146_v32 = vadd.f32 %v781_v26, %v695_v18  ;;  %v356_v34 = vpack.c.bf16 %v351_v25, %v350_v29 }
  0xfc   : > { %v334_v30 = vpop.f32.mrf.mxu0 }
  0xfd   : > { %v355_v31 = vpack.c.bf16 %v349_v28, %v348_v27  ;;  %v1148_v35 = vadd.f32 %v695_v18, %v334_v30  ;;  %v354_v38 = vmul.f32 %v1146_v32, %v1146_v32 }
  0xfe   : > { %v782_v33 = vpop.f32.mrf.mxu0 }
  0xff   : > { %799 = vmatprep.mubr.bf16.mxu1 %v355_v31  ;;  %v352_v39 = vmul.f32 %v1148_v35, %v1148_v35  ;;  %v358_v42 = vpack.c.bf16 %v354_v38, %v354_v38 }
 0x100   : > { %v337_v36 = vpop.f32.mrf.mxu0  ;;  %800 = vmatmul.mubr.bf16.vlgmr.msra.gmra.mxu1 %v356_v34 }
 0x101   : > { %v1150_v37 = vadd.f32 %v695_v18, %v337_v36 }
 0x103   : > { %v353_v40 = vmul.f32 %v1150_v37, %v1150_v37 }
 0x105   : > { %v357_v41 = vpack.c.bf16 %v353_v40, %v352_v39 }
 0x107   : > { %803 = vmatprep.mubr.bf16.mxu1 %v357_v41 }
 0x108   : > { %804 = vmatmul.mubr.bf16.gmra.mxu1 %v358_v42 }
 0x1c0   : > { %v801_v43 = vpop.f32.mrf.mxu1 }
 0x1c1   : > { %878 = vrsqrt.f32 %v801_v43  ;;  %v538_v44 = vadd.f32 1.0, %v801_v43  ;;  %vm503_vm2 = vcmp.eq.f32.partialorder %v801_v43, inf  ;;  %v506_v60 = vand.u32 2147483648, %v801_v43 }
 0x1c2   : > { %v457_v45 = vpop.f32.mrf.mxu1  ;;  %vm505_vm3 = vcmp.eq.f32.partialorder %v801_v43, 0.0 }
 0x1c3   : > { %880 = vrsqrt.f32 %v457_v45  ;;  %v536_v46 = vadd.f32 1.0, %v457_v45  ;;  %vm489_vm4 = vcmp.eq.f32.partialorder %v457_v45, inf  ;;  %vm491_vm5 = vcmp.eq.f32.partialorder %v457_v45, 0.0 }
 0x1c4   : > { %882 = vrcp.f32 %v538_v44  ;;  %v802_v47 = vpop.f32.mrf.mxu1  ;;  %v492_v3 = vand.u32 2147483648, %v457_v45 }
 0x1c5   : > { %884 = vrsqrt.f32 %v802_v47  ;;  %v539_v48 = vadd.f32 1.0, %v802_v47  ;;  %vm510_vm6 = vcmp.eq.f32.partialorder %v802_v47, inf  ;;  %vm512_vm7 = vcmp.eq.f32.partialorder %v802_v47, 0.0 }
 0x1c6   : > { %886 = vrcp.f32 %v536_v46  ;;  %v460_v49 = vpop.f32.mrf.mxu1  ;;  %v513_v10 = vand.u32 2147483648, %v802_v47 }
 0x1c7   : > { %888 = vrsqrt.f32 %v460_v49  ;;  %v537_v50 = vadd.f32 1.0, %v460_v49  ;;  %vm496_vm8 = vcmp.eq.f32.partialorder %v460_v49, inf  ;;  %vm498_vm9 = vcmp.eq.f32.partialorder %v460_v49, 0.0 }
 0x1c8   : > { %890 = vrcp.f32 %v539_v48  ;;  %v1158_v51 = vpop.f32.mrf.mxu1  ;;  %v499_v17 = vand.u32 2147483648, %v460_v49 }
 0x1c9   : > { %892 = vrsqrt.f32 %v1158_v51  ;;  %v542_v52 = vadd.f32 1.0, %v1158_v51  ;;  %vm531_vm10 = vcmp.eq.f32.partialorder %v1158_v51, inf  ;;  %vm533_vm11 = vcmp.eq.f32.partialorder %v1158_v51, 0.0 }
 0x1ca   : > { %894 = vrcp.f32 %v537_v50  ;;  %v1162_v53 = vpop.f32.mrf.mxu1  ;;  %v534_v29 = vand.u32 2147483648, %v1158_v51 }
 0x1cb   : > { %896 = vrsqrt.f32 %v1162_v53  ;;  %v540_v55 = vadd.f32 1.0, %v1162_v53  ;;  %vm517_vm12 = vcmp.eq.f32.partialorder %v1162_v53, inf  ;;  %vm519_vm13 = vcmp.eq.f32.partialorder %v1162_v53, 0.0 }
 0x1cc   : > { %v806_v54 = vpop.f32.mrf.mxu1  ;;  %898 = vrcp.f32 %v542_v52 }
 0x1ce   : > { %v879_v56 = vpop.eup %878  ;;  %v1166_v57 = vpop.f32.mrf.mxu1 }
 0x1cf   : > { %v502_v58 = vmul.f32 %v879_v56, %v801_v43  ;;  %900 = vrsqrt.f32 %v1166_v57  ;;  %v541_v61 = vadd.f32 1.0, %v1166_v57  ;;  %vm524_vm14 = vcmp.eq.f32.partialorder %v1166_v57, inf }
 0x1d0   : > { %v881_v59 = vpop.eup %880  ;;  %902 = vrcp.f32 %v540_v55  ;;  %v527_v48 = vand.u32 2147483648, %v1166_v57  ;;  %vm526_vm15 = vcmp.eq.f32.partialorder %v1166_v57, 0.0 }
 0x1d1   : > { %v883_v62 = vpop.eup %882  ;;  %v504_v63 = vsel %vm503_vm2, %v801_v43, %v502_v58  ;;  %v488_v0 = vmul.f32 %v881_v59, %v457_v45  ;;  %904 = vrcp.f32 %v541_v61 }
 0x1d2   : > { %v885_v1 = vpop.eup %884  ;;  %v507_v2 = vsel %vm505_vm3, %v506_v60, %v504_v63 }
 0x1d3   : > { %v887_v4 = vpop.eup %886  ;;  %v490_v5 = vsel %vm489_vm4, %v457_v45, %v488_v0  ;;  %v509_v6 = vmul.f32 %v885_v1, %v802_v47  ;;  %v552_v8 = vmul.f32 %v883_v62, %v507_v2 }
 0x1d4   : > { %v889_v7 = vpop.eup %888  ;;  %v493_v9 = vsel %vm491_vm5, %v492_v3, %v490_v5 }
 0x1d5   : > { %v891_v11 = vpop.eup %890  ;;  %v511_v12 = vsel %vm510_vm6, %v802_v47, %v509_v6  ;;  %v495_v13 = vmul.f32 %v889_v7, %v460_v49  ;;  %v550_v15 = vmul.f32 %v887_v4, %v493_v9  ;;  %v559_v27 = vmul.f32 %v552_v8, %v1134_v22 }
 0x1d6   : > { %v893_v14 = vpop.eup %892  ;;  %v514_v16 = vsel %vm512_vm7, %v513_v10, %v511_v12  ;;  %v520_v22 = vand.u32 2147483648, %v1162_v53 }
 0x1d7   : > { %v895_v18 = vpop.eup %894  ;;  %v553_v19 = vmul.f32 %v891_v11, %v514_v16  ;;  %v497_v23 = vsel %vm496_vm8, %v460_v49, %v495_v13  ;;  %v530_v25 = vmul.f32 %v893_v14, %v1158_v51  ;;  %v557_v38 = vmul.f32 %v550_v15, %v1130_v20 }
 0x1d8   : > { %v897_v26 = vpop.eup %896  ;;  %v500_v28 = vsel %vm498_vm9, %v499_v17, %v497_v23 }
 0x1d9   : > { %v560_v30 = vmul.f32 %v553_v19, %v1132_v21  ;;  %v551_v31 = vmul.f32 %v895_v18, %v500_v28  ;;  %v532_v33 = vsel %vm531_vm10, %v1158_v51, %v530_v25  ;;  %v516_v34 = vmul.f32 %v897_v26, %v1162_v53  ;;  %v899_v36 = vpop.eup %898 }
 0x1da   : > { %v535_v39 = vsel %vm533_vm11, %v534_v29, %v532_v33 }
 0x1db   : > { %v741_v40 = vpack.c.bf16 %v560_v30, %v559_v27  ;;  %v558_v41 = vmul.f32 %v551_v31, %v1136_v24  ;;  %v556_v42 = vmul.f32 %v899_v36, %v535_v39  ;;  %v518_v43 = vsel %vm517_vm12, %v1162_v53, %v516_v34 }
 0x1dc   : > { %v901_v21 = vpop.eup %900  ;;  %v521_v44 = vsel %vm519_vm13, %v520_v22, %v518_v43 }
 0x1dd   : > { %v736_v45 = vpack.c.bf16 %v558_v41, %v557_v38  ;;  %v563_v46 = vmul.f32 %v556_v42, %v1146_v32  ;;  %v523_v47 = vmul.f32 %v901_v21, %v1166_v57  ;;  %748 = vst [vmem:[%s206_s23 + $0x8] sm:$0xff] %v741_v40   ;;  %v903_v20 = vpop.eup %902 }
 0x1de   : > { %v554_v24 = vmul.f32 %v903_v20, %v521_v44  ;;  %v905_v51 = vpop.eup %904 }
 0x1df   : > { %v731_v49 = vpack.c.bf16 %v563_v46, %v563_v46  ;;  %v525_v50 = vsel %vm524_vm14, %v1166_v57, %v523_v47  ;;  %737 = vst [vmem:[%s206_s23] sm:$0xff] %v736_v45  }
 0x1e0   : > { %v528_v32 = vsel %vm526_vm15, %v527_v48, %v525_v50  ;;  %v561_v53 = vmul.f32 %v554_v24, %v1148_v35 }
 0x1e1   : > { %v555_v52 = vmul.f32 %v905_v51, %v528_v32  ;;  %599 = vst [vmem:[%s206_s23 + $0x18] sm:$0xf] %v731_v49 }
 0x1e3   : > { %v562_v54 = vmul.f32 %v555_v52, %v1150_v37 }
 0x1e5   : > { %v746_v55 = vpack.c.bf16 %v562_v54, %v561_v53 }
 0x1e7   : > { %749 = vst [vmem:[%s206_s23 + $0x10] sm:$0xff] %v746_v55  }
 0x1e8   : > { %945 = shalt.err (!%p942_p0)
}
 0x1e9   : > { %s946_s10 = scalar_lea.hbm %s1199_s5, 448  ;;  %s950_s13 = scalar_lea.hbm %s1249_s4, 896 }
 0x1ea   : > { %p947_p1 = scmp.ne.s32.totalorder %s1199_s5, %s946_s10  ;;  %p951_p4 = scmp.lt.s32.totalorder %s1199_s5, %s1249_s4 }
 0x1eb   : > { %p952_p7 = scmp.lt.s32.totalorder %s950_s13, %s946_s10 }
 0x1ec   : > { %p948_p2 = pnand %p947_p1, %p1067_p5 }
 0x1ed   : > { %p953_p8 = por %p952_p7, %p951_p4 }
 0x1ee   : > { %p949_p3 = pneg %p948_p2 }
 0x1f0   : > { %p954_p6 = pnand %p953_p8, %p949_p3 }
 0x1f2   : > { %957 = shalt.err (!%p954_p6)
}
 0x1f3   : > { %s1002_s22 = smov 64   ;;  %s1003_s23 = smov 4  }
 0x1f4   : > { %813 = dma.vmem_to_hbm [thread:$0]  (%p1067_p5), %s1201_s28, 448, %s1199_s5, %s1205_s19, %s1002_s22, %s1002_s22, %s1003_s23  }
 0x1f5 PF: > { %p825_p9 = scmp.ge.s32.totalorder %s996_s18, 2  ;;  %s629_s27 = sand.u32 1, %s984_s15  }
 0x1f6   : > { %p1253_p10 = scmp.ne.s32.totalorder %s1251_s26, 0  ;;  %s630_s29 = scalar_lea.sflag [#allocation4], %s629_s27 }
 0x1f8   : > { %p820_p11 = pnand %p825_p9, %p1253_p10 }
 0x1fa   : > { %p821_p12 = pneg %p820_p11 }
 0x1fc   : > { %979 = dma.done.wait (%p821_p12), %s630_s29, 448  }
 0x1fd   : > { %981 = vsyncadd (%p821_p12), %s630_s29, 4294966848  ;;  %p15_p13 = scmp.ge.s32.totalorder %s1054_s21, 4   ;;  %s1254_s15 = smov %s988_s16 }
 0x1fe   : > { %s1255_s16 = smov %s992_s17  ;;  %s1256_s17 = smov %s1065_s24 }
 0x1ff   : > { %s1257_s18 = smov %s1054_s21  ;;  %17 = sbr.rel (!%p15_p13) target bundleno = 4 (0x4), region = 76 }
 0x204   :  { %635 = vsyncpa [#allocation3], 1 }
 0x205   :  { %637 = vsyncpa [#allocation3 + $0x1], 1 }
 0x206   :  { %638 = vsyncpa [#allocation4], 1 }
 0x207   :  { %640 = vsyncpa [#allocation4 + $0x1], 1 }

</bundles_post_ra>
